<compile_context>
chip_gen: v7x
topology: tpu7x:2x2x1
jax: 0.10.0
libtpu: 0.0.40
codegen_flags: <defaults>
</compile_context>

<pallas_src>
import jax
import jax.numpy as jnp
from jax.experimental import pallas as pl
from jax.experimental.pallas import tpu as pltpu

EPS = 1e-5


def gconv_kernel(w_ref, x_ref, fcw_ref, perm_ref, bias_ref, out_ref):
    # w_ref:    (bb, N, N*J)      f32   graph operators, NATIVE layout (k = m*J + j)
    # x_ref:    (bb, N, Fin)      f32   node features
    # fcw_ref:  (Fin, J*N*Fout)   bf16  BN-folded fc weight; column = j*(N*Fout) + n*Fout + o
    # perm_ref: (N*J, N*J)        bf16  permutation: interleaved k = m*J+j  ->  j-major j*N+m
    # bias_ref: (1, N*Fout)       f32   BN-folded bias, tiled N x
    # out_ref:  (bb, N*Fout)      f32   lane-dense output rows
    bb, N, NJ = w_ref.shape
    Fin = x_ref.shape[-1]
    NF = out_ref.shape[-1]
    J = NJ // N
    Fout = NF // N

    # 1) One stacked matmul for the whole block: every (batch, node) row of x against the
    #    folded fc weight for every j at once (256 output lanes -> fills wide MXU).
    xs = x_ref[...].reshape(bb * N, Fin).astype(jnp.bfloat16)            # leading-dim merge: free
    zw = jnp.dot(xs, fcw_ref[...], preferred_element_type=jnp.float32)   # (bb*N, J*NF)

    # 2) Re-expose the batch axis and stack the J lane groups as extra contraction rows.
    #    Only 128-aligned static lane slices + a sublane concat -- no lane-splitting reshape.
    parts = [zw[:, j * NF:(j + 1) * NF].reshape(bb, N, NF) for j in range(J)]
    zf = jnp.concatenate(parts, axis=1).astype(jnp.bfloat16)             # (bb, J*N, NF), j-major

    # 3) Reorder W's contraction lanes from the native interleaved order (m*J + j) to zf's
    #    j-major order with one tiny constant-permutation matmul (replaces the old HBM-pass
    #    transpose of W in the wrapper).
    wb = w_ref[...].reshape(bb * N, NJ).astype(jnp.bfloat16)
    wj = jnp.dot(wb, perm_ref[...], preferred_element_type=jnp.float32)  # exact (0/1 matrix)
    wj = wj.reshape(bb, N, NJ).astype(jnp.bfloat16)

    # 4) gmul + fc fused: one batched matmul, contraction over (m, j) at once (K = N*J).
    a = jnp.einsum('bnk,bko->bno', wj, zf,
                   preferred_element_type=jnp.float32)                   # (bb, N, NF)

    # 5) Lane-dense flatten: out[b, n*Fout + o] = a[b, n, n*Fout + o], then folded bias.
    lane = jax.lax.broadcasted_iota(jnp.int32, (N, NF), 1)
    row = jax.lax.broadcasted_iota(jnp.int32, (N, NF), 0)
    lo = row * Fout
    sel = (lane >= lo) & (lane < lo + Fout)
    out_ref[...] = jnp.sum(jnp.where(sel[None, :, :], a, 0.0), axis=1) + bias_ref[...]


def _pick_block_b(B, N, J, Fin, Fout, *, cap=64, vmem_budget=8 << 20):
    """Batches per grid step.

    v5e/v6e have a single TensorCore, so the grid is a serial loop and each step costs
    ~0.35 us of fixed overhead: take the fewest steps that fit the VMEM budget (one step
    for small B).  Multiples of 8 are preferred so the (bb, N*Fout) output store is an
    unmasked full-sublane vst.  The cap / VMEM bound only bites at large B*N (and keeps
    v7x's smaller 64 MiB VMEM safe); when B exceeds the cap, multiple steps remain and
    dimension_semantics=('parallel',) lets v7x's two TCs split them.
    """
    NF = N * Fout
    NJ = N * J
    # rough per-batch bytes: double-buffered f32 inputs + f32 output block + in-kernel temps
    per_b = 2 * 4 * (N * NJ + N * Fin) + 2 * 4 * NF + 4 * N * (J * NF + NF + NJ)
    bb_max = int(max(1, min(B, cap, vmem_budget // max(per_b, 1))))
    divisors = [d for d in range(1, bb_max + 1) if B % d == 0]
    mult8 = [d for d in divisors if d % 8 == 0]
    return mult8[-1] if mult8 else divisors[-1]


def gconv_forward(W, x, fc_weight, fc_bias, bn_gamma=None, bn_beta=None,
                  bn_mean=None, bn_var=None, *, bn_bool=True, block_b=None):
    """Returns (W, x_out) like the PyTorch module; x_out: (B, N, Fout)."""
    B, N, _, J = W.shape
    Fin = x.shape[-1]
    Fout = fc_weight.shape[0]
    NF = N * Fout
    NJ = N * J
    f32 = jnp.float32

    # Fold BatchNorm (eval mode) + fc bias into a per-output-channel scale/bias.
    if bn_bool:
        scale = bn_gamma.astype(f32) * jax.lax.rsqrt(bn_var.astype(f32) + EPS)
        bias_eff = (fc_bias.astype(f32) - bn_mean.astype(f32)) * scale + bn_beta.astype(f32)
    else:
        scale = jnp.ones((Fout,), f32)
        bias_eff = fc_bias.astype(f32)

    # Lane-dense head trick: the folded fc weight is tiled N x along its output dim so the
    # kernel's matmul natively produces N*Fout (=128 here) lanes per node group.  The cost is
    # quadratic in N -- keep it only for small heads.
    assert NF <= 2048, "N*Fout too large for the lane-dense tiled-fc path"
    # TODO(synk): add an untiled (J*Fin, Fout) fallback path for large N*Fout.

    fcw3 = (fc_weight.astype(f32) * scale[:, None]).T.reshape(J, Fin, Fout)    # [j, f, o]
    fcw_wide = jnp.broadcast_to(fcw3[:, :, None, :], (J, Fin, N, Fout))        # [j, f, n, o]
    fcw_wide = jnp.transpose(fcw_wide, (1, 0, 2, 3)).reshape(Fin, J * NF)      # col = j*NF+n*Fout+o
    fcw_wide = fcw_wide.astype(jnp.bfloat16)
    bias_tiled = jnp.tile(bias_eff, N).reshape(1, NF)                          # (1, NF) f32

    # Constant permutation taking W's native contraction order k = m*J + j to zf's j*N + m.
    kk = jnp.arange(NJ)
    perm = jax.nn.one_hot((kk % J) * N + kk // J, NJ, dtype=jnp.bfloat16)      # (NJ, NJ)

    # W consumed in native layout via a FREE reshape -- no transpose / dtype HBM pass.
    W2 = W.reshape(B, N, NJ)

    bb = _pick_block_b(B, N, J, Fin, Fout) if block_b is None else block_b
    assert B % bb == 0, "block_b must divide B"
    num_blocks = B // bb

    out_flat = pl.pallas_call(
        gconv_kernel,
        out_shape=jax.ShapeDtypeStruct((B, NF), jnp.float32),
        grid=(num_blocks,),
        in_specs=[
            pl.BlockSpec((bb, N, NJ), lambda i: (i, 0, 0)),     # W block (native layout)
            pl.BlockSpec((bb, N, Fin), lambda i: (i, 0, 0)),    # x block
            pl.BlockSpec((Fin, J * NF), lambda i: (0, 0)),      # folded fc weight (resident)
            pl.BlockSpec((NJ, NJ), lambda i: (0, 0)),           # permutation (resident)
            pl.BlockSpec((1, NF), lambda i: (0, 0)),            # folded bias (resident)
        ],
        out_specs=pl.BlockSpec((bb, NF), lambda i: (i, 0)),      # lane-dense 2-D output
        compiler_params=pltpu.CompilerParams(
            dimension_semantics=("parallel",)),
    )(W2, x.astype(f32), fcw_wide, perm, bias_tiled)

    x_out = out_flat.reshape(B, N, Fout)
    return W, x_out


def gconv_reference_quantized(W, x, fc_weight, fc_bias, g, bta, m, v, bn_bool=True):
    """Pure-JAX reference using the same bf16-rounded operands the kernel consumes
    (W, x, BN-folded fc weight); accumulation is f32 in both, so only matmul
    rounding / association differences remain."""
    f32, bf = jnp.float32, jnp.bfloat16
    if bn_bool:
        scale = g.astype(f32) * jax.lax.rsqrt(v.astype(f32) + EPS)
        bias_eff = (fc_bias.astype(f32) - m.astype(f32)) * scale + bta.astype(f32)
    else:
        scale = jnp.ones_like(fc_bias, dtype=f32)
        bias_eff = fc_bias.astype(f32)
    Wq = W.astype(bf).astype(f32)
    xq = x.astype(bf).astype(f32)
    fwq = (fc_weight.astype(f32) * scale[:, None]).T.astype(bf).astype(f32)   # (J*Fin, Fout)
    B, N = W.shape[0], W.shape[1]
    gx = jnp.einsum('bnmj,bmf->bnjf', Wq, xq,
                    precision=jax.lax.Precision.HIGHEST).reshape(B, N, -1)    # (B, N, J*Fin)
    y = jnp.einsum('bnk,ko->bno', gx, fwq,
                   precision=jax.lax.Precision.HIGHEST) + bias_eff
    return y


if __name__ == "__main__":
    B, N, Fin, J, Fout = 2, 8, 8, 2, 16

    key = jax.random.PRNGKey(0)
    kW, kx, kfw, kfb, kg, kb, km, kv = jax.random.split(key, 8)

    W = jax.random.normal(kW, (B, N, N, J), jnp.float32)          # graph operators
    x = jax.random.normal(kx, (B, N, Fin), jnp.float32)           # node features

    # deterministic parameter init (synthetic, not a checkpoint)
    fc_weight = jax.random.normal(kfw, (Fout, J * Fin), jnp.float32) * 0.1
    fc_bias = jax.random.normal(kfb, (Fout,), jnp.float32) * 0.1
    bn_gamma = 1.0 + 0.1 * jax.random.normal(kg, (Fout,), jnp.float32)
    bn_beta = 0.1 * jax.random.normal(kb, (Fout,), jnp.float32)
    bn_mean = 0.1 * jax.random.normal(km, (Fout,), jnp.float32)
    bn_var = 1.0 + 0.1 * jax.nn.softplus(jax.random.normal(kv, (Fout,), jnp.float32))

    W_out, x_out = gconv_forward(W, x, fc_weight, fc_bias,
                                 bn_gamma, bn_beta, bn_mean, bn_var, bn_bool=True)
    x_out = jax.block_until_ready(x_out)
    assert x_out.shape == (B, N, Fout)

    ref = gconv_reference_quantized(W, x, fc_weight, fc_bias,
                                    bn_gamma, bn_beta, bn_mean, bn_var, bn_bool=True)
    assert jnp.allclose(x_out, ref, atol=1e-2, rtol=1e-2), \
        float(jnp.max(jnp.abs(x_out - ref)))

    # Also exercise the bn_bool=False path (folds to scale=1 / bias=fc_bias).
    _, x_out2 = gconv_forward(W, x, fc_weight, fc_bias, bn_bool=False)
    x_out2 = jax.block_until_ready(x_out2)
    ref2 = gconv_reference_quantized(W, x, fc_weight, fc_bias, None, None, None, None,
                                     bn_bool=False)
    assert jnp.allclose(x_out2, ref2, atol=1e-2, rtol=1e-2), \
        float(jnp.max(jnp.abs(x_out2 - ref2)))

    print("KERNEL_OK")
</pallas_src>

<mosaic_0001>
module attributes {stable_mosaic.version = 11 : i64} {
  func.func @gconv_kernel(%arg0: i32, %arg1: memref<2x8x16xf32, #tpu.memory_space<vmem>>, %arg2: memref<2x8x8xf32, #tpu.memory_space<vmem>>, %arg3: memref<8x256xbf16, #tpu.memory_space<vmem>>, %arg4: memref<16x16xbf16, #tpu.memory_space<vmem>>, %arg5: memref<1x128xf32, #tpu.memory_space<vmem>>, %arg6: memref<2x128xf32, #tpu.memory_space<vmem>>) attributes {dimension_semantics = [#tpu.dimension_semantics<parallel>], iteration_bounds = array<i64: 1>, scalar_prefetch = 0 : i64, scratch_operands = 0 : i64, tpu.core_type = #tpu.core_type<tc>, window_params = [{transform_indices = @transform_0, window_bounds = array<i64: 2, 8, 16>}, {transform_indices = @transform_1, window_bounds = array<i64: 2, 8, 8>}, {pipeline_mode = #tpu.pipeline_mode<synchronous>, transform_indices = @transform_2, window_bounds = array<i64: 8, 256>}, {pipeline_mode = #tpu.pipeline_mode<synchronous>, transform_indices = @transform_3, window_bounds = array<i64: 16, 16>}, {pipeline_mode = #tpu.pipeline_mode<synchronous>, transform_indices = @transform_4, window_bounds = array<i64: 1, 128>}, {transform_indices = @transform_5, window_bounds = array<i64: 2, 128>}]} {
    %c0 = arith.constant 0 : index
    %c0_0 = arith.constant 0 : index
    %c0_1 = arith.constant 0 : index
    %0 = vector.load %arg2[%c0, %c0_0, %c0_1] : memref<2x8x8xf32, #tpu.memory_space<vmem>>, vector<2x8x8xf32>
    %1 = vector.shape_cast %0 : vector<2x8x8xf32> to vector<16x8xf32>
    %2 = arith.truncf %1 : vector<16x8xf32> to vector<16x8xbf16>
    %c0_2 = arith.constant 0 : index
    %c0_3 = arith.constant 0 : index
    %3 = vector.load %arg3[%c0_2, %c0_3] : memref<8x256xbf16, #tpu.memory_space<vmem>>, vector<8x256xbf16>
    %cst = arith.constant dense<0.000000e+00> : vector<16x256xf32>
    %4 = tpu.matmul %2, %3, %cst {dimension_numbers = #tpu.dot_dimension_numbers<[1], [0], [0], [1], [0, 0, 1, 1], [], []>} : vector<16x8xbf16>, vector<8x256xbf16>, vector<16x256xf32> -> vector<16x256xf32>
    %5 = vector.extract_strided_slice %4 {offsets = [0, 0], sizes = [16, 128], strides = [1, 1]} : vector<16x256xf32> to vector<16x128xf32>
    %6 = vector.shape_cast %5 : vector<16x128xf32> to vector<2x8x128xf32>
    %7 = vector.extract_strided_slice %4 {offsets = [0, 128], sizes = [16, 128], strides = [1, 1]} : vector<16x256xf32> to vector<16x128xf32>
    %8 = vector.shape_cast %7 : vector<16x128xf32> to vector<2x8x128xf32>
    %9 = tpu.concatenate %6, %8 in 1 : vector<2x8x128xf32>, vector<2x8x128xf32> -> vector<2x16x128xf32>
    %10 = arith.truncf %9 : vector<2x16x128xf32> to vector<2x16x128xbf16>
    %c0_4 = arith.constant 0 : index
    %c0_5 = arith.constant 0 : index
    %c0_6 = arith.constant 0 : index
    %11 = vector.load %arg1[%c0_4, %c0_5, %c0_6] : memref<2x8x16xf32, #tpu.memory_space<vmem>>, vector<2x8x16xf32>
    %12 = vector.shape_cast %11 : vector<2x8x16xf32> to vector<16x16xf32>
    %13 = arith.truncf %12 : vector<16x16xf32> to vector<16x16xbf16>
    %c0_7 = arith.constant 0 : index
    %c0_8 = arith.constant 0 : index
    %14 = vector.load %arg4[%c0_7, %c0_8] : memref<16x16xbf16, #tpu.memory_space<vmem>>, vector<16x16xbf16>
    %cst_9 = arith.constant dense<0.000000e+00> : vector<16x16xf32>
    %15 = tpu.matmul %13, %14, %cst_9 {dimension_numbers = #tpu.dot_dimension_numbers<[1], [0], [0], [1], [0, 0, 1, 1], [], []>} : vector<16x16xbf16>, vector<16x16xbf16>, vector<16x16xf32> -> vector<16x16xf32>
    %16 = vector.shape_cast %15 : vector<16x16xf32> to vector<2x8x16xf32>
    %17 = arith.truncf %16 : vector<2x8x16xf32> to vector<2x8x16xbf16>
    "tpu.trace_start"() <{level = 10 : i32, message = "bnk,bko->bno"}> : () -> ()
    %cst_10 = arith.constant dense<0.000000e+00> : vector<2x8x128xf32>
    %18 = tpu.matmul %17, %10, %cst_10 {dimension_numbers = #tpu.dot_dimension_numbers<[2], [1], [1], [2], [0, 0, 0, 1, 1, 2], [0], [0]>} : vector<2x8x16xbf16>, vector<2x16x128xbf16>, vector<2x8x128xf32> -> vector<2x8x128xf32>
    "tpu.trace_stop"() : () -> ()
    %19 = tpu.iota {dimensions = array<i32: 1>} : vector<8x128xi32>
    %20 = tpu.iota {dimensions = array<i32: 0>} : vector<8x128xi32>
    %c16_i32 = arith.constant 16 : i32
    %21 = vector.broadcast %c16_i32 : i32 to vector<8x128xi32>
    %22 = arith.muli %20, %21 : vector<8x128xi32>
    %23 = arith.cmpi sge, %19, %22 : vector<8x128xi32>
    %c16_i32_11 = arith.constant 16 : i32
    %24 = vector.broadcast %c16_i32_11 : i32 to vector<8x128xi32>
    %25 = arith.addi %22, %24 : vector<8x128xi32>
    %26 = arith.cmpi slt, %19, %25 : vector<8x128xi32>
    %27 = arith.andi %23, %26 : vector<8x128xi1>
    %28 = vector.shape_cast %27 : vector<8x128xi1> to vector<1x8x128xi1>
    %cst_12 = arith.constant 0.000000e+00 : f32
    %29 = vector.shape_cast %28 : vector<1x8x128xi1> to vector<1x8x128xi1>
    %30 = vector.broadcast %29 : vector<1x8x128xi1> to vector<2x8x128xi1>
    %31 = vector.broadcast %cst_12 : f32 to vector<2x8x128xf32>
    %32 = arith.select %30, %18, %31 : vector<2x8x128xi1>, vector<2x8x128xf32>
    %cst_13 = arith.constant dense<0.000000e+00> : vector<2x128xf32>
    %33 = vector.multi_reduction <add>, %32, %cst_13 [1] : vector<2x8x128xf32> to vector<2x128xf32>
    %c0_14 = arith.constant 0 : index
    %c0_15 = arith.constant 0 : index
    %34 = vector.load %arg5[%c0_14, %c0_15] : memref<1x128xf32, #tpu.memory_space<vmem>>, vector<1x128xf32>
    %35 = vector.broadcast %34 : vector<1x128xf32> to vector<2x128xf32>
    %36 = arith.addf %33, %35 : vector<2x128xf32>
    %c0_16 = arith.constant 0 : index
    %c0_17 = arith.constant 0 : index
    %37 = vector.load %arg6[%c0_16, %c0_17] : memref<2x128xf32, #tpu.memory_space<vmem>>, vector<2x128xf32>
    tpu.vector_store %arg6[%c0_16, %c0_17], %36 {strides = array<i32>} : memref<2x128xf32, #tpu.memory_space<vmem>>, vector<2x128xf32>,
    return
  }
  func.func @transform_0(%arg0: i32) -> (i32, i32, i32) {
    %c0_i32 = arith.constant 0 : i32
    %c0_i32_0 = arith.constant 0 : i32
    %c0_i32_1 = arith.constant 0 : i32
    return %arg0, %c0_i32, %c0_i32_0 : i32, i32, i32
  }
  func.func @transform_1(%arg0: i32) -> (i32, i32, i32) {
    %c0_i32 = arith.constant 0 : i32
    %c0_i32_0 = arith.constant 0 : i32
    %c0_i32_1 = arith.constant 0 : i32
    return %arg0, %c0_i32, %c0_i32_0 : i32, i32, i32
  }
  func.func @transform_2(%arg0: i32) -> (i32, i32) {
    %c0_i32 = arith.constant 0 : i32
    %c0_i32_0 = arith.constant 0 : i32
    %c0_i32_1 = arith.constant 0 : i32
    return %c0_i32, %c0_i32_0 : i32, i32
  }
  func.func @transform_3(%arg0: i32) -> (i32, i32) {
    %c0_i32 = arith.constant 0 : i32
    %c0_i32_0 = arith.constant 0 : i32
    %c0_i32_1 = arith.constant 0 : i32
    return %c0_i32, %c0_i32_0 : i32, i32
  }
  func.func @transform_4(%arg0: i32) -> (i32, i32) {
    %c0_i32 = arith.constant 0 : i32
    %c0_i32_0 = arith.constant 0 : i32
    %c0_i32_1 = arith.constant 0 : i32
    return %c0_i32, %c0_i32_0 : i32, i32
  }
  func.func @transform_5(%arg0: i32) -> (i32, i32) {
    %c0_i32 = arith.constant 0 : i32
    %c0_i32_0 = arith.constant 0 : i32
    return %arg0, %c0_i32 : i32, i32
  }
}

</mosaic_0001>

<bundles_post_ra>
// kernel: tpu_custom_call.1
= control target key start
LH: loop header
LB: loop body
LE: loop exit
PB: predicated region body
PF: predicated region fallthrough
CT: control target
= control target key end

     0   :  { %10 = vsyncpa [#allocation3], 0  ;;  %s572_s0 = inlined_call_operand.hbm [shape: f32[2,8,16], index: 0, kind: input, shape index: {}]   ;;  %s573_s1 = inlined_call_operand.hbm [shape: f32[2,8,8], index: 1, kind: input, shape index: {}]   ;;  %s574_s2 = inlined_call_operand.hbm [shape: bf16[8,256], index: 2, kind: input, shape index: {}]   ;;  %s575_s3 = inlined_call_operand.vmem [shape: bf16[16,16], index: 3, kind: input, shape index: {}]   ;;  %s576_s4 = inlined_call_operand.vmem [shape: f32[1,128], index: 4, kind: input, shape index: {}]   ;;  %s577_s5 = inlined_call_operand.hbm [shape: f32[2,128], index: 5, kind: output, shape index: {}]  }
   0x1   :  { %11 = vsyncpa [#allocation6], 0 }
   0x2   :  { %12 = vsyncpa [#allocation4], 0  ;;  %s466_s18 = smov [#allocation5]   ;;  %s467_s20 = smov [#allocation2]  }
   0x3   :  { %s30_s19 = sshll.u32 %s466_s18, 4  ;;  %s18_s21 = sshll.u32 %s467_s20, 4  ;;  %s31_s19 = int_to_ptr.vmem [resolvable:$true] %s30_s19  ;;  %s505_s21 = int_to_ptr.vmem [resolvable:$true] %s18_s21 }
   0x4   :  { %s372_s24 = scalar_lea.hbm %s573_s1, 256 }
   0x5   :  { %p373_p0 = scmp.ne.s32.totalorder %s573_s1, %s372_s24  ;;  %p376_p1 = scmp.lt.u32.totalorder %s372_s24, %s573_s1 }
   0x7   :  { %p378_p2 = pnand %p376_p1, %p373_p0 }
   0x9   :  { %381 = shalt.err (!%p378_p2)
}
   0xa   :  { %s382_s29 = scalar_lea.vmem %s31_s19, 256  ;;  %p387_p4 = scmp.lt.s32.totalorder %s31_s19, %s31_s19 }
   0xb   :  { %p383_p3 = scmp.ne.s32.totalorder %s31_s19, %s382_s29  ;;  %p388_p5 = scmp.lt.s32.totalorder %s382_s29, %s382_s29 }
   0xd   :  { %p389_p6 = por %p388_p5, %p387_p4 }
   0xf   :  { %p390_p7 = pnand %p389_p6, %p383_p3 }
  0x11   :  { %393 = shalt.err (!%p390_p7)
}
  0x12   :  { %s468_s30 = smov 128   ;;  %s469_s6 = smov 8  }
  0x13   :  { %36 = dma.hbm_to_vmem [thread:$0]  %s573_s1, 256, %s31_s19, [#allocation6], %s468_s30, %s468_s30, %s469_s6  }
  0x14   :  { %s394_s11 = scalar_lea.hbm %s572_s0, 256 }
  0x15   :  { %p395_p8 = scmp.ne.s32.totalorder %s572_s0, %s394_s11  ;;  %p398_p9 = scmp.lt.u32.totalorder %s394_s11, %s572_s0 }
  0x17   :  { %p400_p10 = pnand %p398_p9, %p395_p8 }
  0x19   :  { %403 = shalt.err (!%p400_p10)
}
  0x1a   :  { %s404_s16 = scalar_lea.vmem %s505_s21, 256  ;;  %p409_p12 = scmp.lt.s32.totalorder %s505_s21, %s505_s21 }
  0x1b   :  { %p405_p11 = scmp.ne.s32.totalorder %s505_s21, %s404_s16  ;;  %p410_p13 = scmp.lt.s32.totalorder %s404_s16, %s404_s16 }
  0x1d   :  { %p411_p0 = por %p410_p13, %p409_p12 }
  0x1f   :  { %p412_p1 = pnand %p411_p0, %p405_p11 }
  0x21   :  { %415 = shalt.err (!%p412_p1)
}
  0x22   :  { %24 = dma.hbm_to_vmem [thread:$0]  %s572_s0, 256, %s505_s21, [#allocation3], %s468_s30, %s468_s30, %s469_s6  }
  0x23   :  { %s470_s18 = smov [#allocation7]   ;;  %s416_s23 = scalar_lea.hbm %s574_s2, 128 }
  0x24   :  { %s43_s19 = sshll.u32 %s470_s18, 4  ;;  %p417_p2 = scmp.ne.s32.totalorder %s574_s2, %s416_s23  ;;  %s44_s19 = int_to_ptr.vmem [resolvable:$true] %s43_s19 }
  0x25   :  { %p420_p3 = scmp.lt.u32.totalorder %s416_s23, %s574_s2 }
  0x27   :  { %p422_p4 = pnand %p420_p3, %p417_p2 }
  0x29   :  { %425 = shalt.err (!%p422_p4)
}
  0x2a   :  { %s426_s28 = scalar_lea.vmem %s44_s19, 128  ;;  %p431_p6 = scmp.lt.s32.totalorder %s44_s19, %s44_s19 }
  0x2b   :  { %p427_p5 = scmp.ne.s32.totalorder %s44_s19, %s426_s28  ;;  %p432_p7 = scmp.lt.s32.totalorder %s426_s28, %s426_s28 }
  0x2d   :  { %p433_p8 = por %p432_p7, %p431_p6 }
  0x2f   :  { %p434_p9 = pnand %p433_p8, %p427_p5 }
  0x31   :  { %437 = shalt.err (!%p434_p9)
}
  0x32   :  { %46 = dma.hbm_to_vmem [thread:$0]  %s574_s2, 128, %s44_s19, [#allocation6]  }
  0x33   :  { %460 = dma.done.wait [#allocation3], 256  }
  0x34   :  { %461 = vsyncadd [#allocation3], 4294967040 }
  0x35   :  { %462 = dma.done.wait [#allocation6], 384  }
  0x36   :  { %463 = vsyncadd [#allocation6], 4294966912  ;;  %v471_v0 = vmov 0   ;;  %v472_v1 = vmov 0.0   ;;  %vm473_vm0 = vmmov 0   ;;  %v64_v2 = vld [vmem:[#allocation7] sm:$0xff]  ;;  %v270_v25 = vlaneseq }
  0x37   :  { %113 = vmatprep.mubr.bf16.mxu0 %v471_v0  ;;  %342 = vmatprep.subr.bf16.mxu1 %v472_v1  ;;  %vm74_vm1 = vcmask 1043456   ;;  %v61_v3 = vld [vmem:[#allocation5] sm:$0xff]  ;;  %v62_v4 = vld [vmem:[#allocation5 + $0x8] sm:$0xff]  ;;  %v328_v5 = vcombine.high %v64_v2, %v64_v2  ;;  %v327_v6 = vcombine.low %v64_v2, %v64_v2  ;;  %v371_v7 = vld [vmem:[%s575_s3] sm:$0xff]   ;;  %vm137_vm2 = vcmask 130048   ;;  %s474_s6 = smov [#allocation8]  }
  0x38   :  { %344 = vmatprep.mubr.msk.bf16.mxu1 %vm473_vm0, %v472_v1  ;;  %v126_v8 = vld [vmem:[#allocation2] sm:$0xff]  ;;  %v127_v9 = vld [vmem:[#allocation2 + $0x8] sm:$0xff]  ;;  %v63_v11 = vpack.c.bf16 %v62_v4, %v61_v3  ;;  %343 = vmatpush3.bf16.msra.mxu1 %v371_v7  ;;  %vm70_vm3 = vcmask 64512   ;;  %v273_v26 = vshrl.u32 %v270_v25, 7  ;;  %v271_v28 = vand.u32 127, %v270_v25  ;;  %s317_s7 = sshll.u32 %s474_s6, 4  ;;  %s318_s7 = int_to_ptr.vmem [resolvable:$true] %s317_s7 }
  0x39   :  { %329 = vmatprep.subr.msk.bf16.mxu0 %vm74_vm1, %v328_v5  ;;  %v76_v10 = vsel %vm74_vm1, %v327_v6, 0  ;;  %v128_v12 = vpack.c.bf16 %v127_v9, %v126_v8  ;;  %354 = vmatprep.subr.bf16.mxu1 %v472_v1  ;;  %v335_v52 = vld [vmem:[%s576_s4] ss:$0 sm:$0xff]  ;;  %vm307_vm7 = vcmask 1041409   ;;  %s438_s8 = scalar_lea.vmem %s318_s7, 32  ;;  %p443_p11 = scmp.lt.s32.totalorder %s318_s7, %s318_s7 }
  0x3a   :  { %82 = vmatpush1.bf16.msra.mxu0 %v76_v10  ;;  %v274_v27 = vmul.u32 16, %v273_v26  ;;  %p439_p10 = scmp.ne.s32.totalorder %s318_s7, %s438_s8  ;;  %p444_p12 = scmp.lt.s32.totalorder %s438_s8, %s438_s8 }
  0x3b   :  { %348 = vmatprep.subr.bf16.mxu0 %v472_v1  ;;  %345 = vmatmul.mubr.msk.bf16.vlgmr.msra.gmra.mrb[0].mxu1 %vm137_vm2, %v128_v12 }
  0x3c   :  { %356 = vmatprep.mubr.msk.bf16.mxu1 %vm473_vm0, %v472_v1  ;;  %v276_v29 = vadd.s32 16, %v274_v27  ;;  %vm275_vm4 = vcmp.ge.s32.totalorder %v271_v28, %v274_v27  ;;  %p445_p13 = por %p444_p12, %p443_p11 }
  0x3d   :  { %330 = vmatmul.mubr.msk.bf16.vlgmr.msra.gmra.mrb[0].mxu0 %vm70_vm3, %v63_v11 }
  0x3e   :  { %350 = vmatprep.mubr.msk.bf16.mxu0 %vm473_vm0, %v472_v1  ;;  %vm277_vm5 = vcmp.lt.s32.totalorder %v271_v28, %v276_v29  ;;  %p446_p0 = pnand %p445_p13, %p439_p10 }
  0x3f   :  { %vm278_vm6 = vmand %vm275_vm4, %vm277_vm5 }
 0x10e   :  { %v175_v13 = vpop.f32.mrb[0].mxu1 }
 0x10f   :  { %v346_v15 = vpop.f32.mrb[1].mxu1  ;;  %v182_v22 = vpack.c.bf16 %v175_v13, %v175_v13 }
 0x110   :  { %v115_v14 = vpop.f32.mrb[0].mxu0  ;;  %v178_v17 = vpop.f32.mrb[2].mxu1 }
 0x111   :  { %v117_v16 = vpop.f32.mrb[1].mxu0  ;;  %v347_v20 = vpop.f32.mrb[3].mxu1  ;;  %v183_v24 = vpack.c.bf16 %v178_v17, %v178_v17 }
 0x112   :  { %v124_v18 = vpack.c.bf16 %v117_v16, %v115_v14  ;;  %v119_v19 = vpop.f32.mrb[2].mxu0 }
 0x113   :  { %v121_v21 = vpop.f32.mrb[3].mxu0 }
 0x114   :  { %v125_v23 = vpack.c.bf16 %v121_v21, %v119_v19  ;;  %349 = vmatpush3.bf16.msra.mxu0 %v124_v18 }
 0x116   :  { %355 = vmatpush3.bf16.msra.mxu1 %v125_v23 }
 0x117   :  { %351 = vmatmul.mubr.msk.bf16.vlgmr.msra.gmra.mrb[4].mxu0 %vm137_vm2, %v182_v22 }
 0x119   :  { %357 = vmatmul.mubr.msk.bf16.vlgmr.msra.gmra.mrb[4].mxu1 %vm137_vm2, %v183_v24 }
 0x1ea   :  { %v221_v30 = vpop.f32.mrb[4].mxu0 }
 0x1eb   :  { %v281_v31 = vsel %vm278_vm6, %v221_v30, 0.0  ;;  %v352_v32 = vpop.f32.mrb[5].mxu0 }
 0x1ec   :  { %v283_v33 = vrot.slane %v281_v31, 4  ;;  %v264_v34 = vpop.f32.mrb[4].mxu1  ;;  %v224_v35 = vpop.f32.mrb[6].mxu0 }
 0x1ed   :  { %v282_v36 = vsel %vm278_vm6, %v264_v34, 0.0  ;;  %v358_v37 = vpop.f32.mrb[5].mxu1  ;;  %v353_v38 = vpop.f32.mrb[7].mxu0 }
 0x1ee   :  { %v284_v39 = vadd.f32 %v283_v33, %v281_v31  ;;  %v289_v40 = vrot.slane %v282_v36, 4  ;;  %v267_v41 = vpop.f32.mrb[6].mxu1 }
 0x1ef   :  { %v359_v42 = vpop.f32.mrb[7].mxu1 }
 0x1f0   :  { %v285_v43 = vrot.slane %v284_v39, 2  ;;  %v290_v44 = vadd.f32 %v289_v40, %v282_v36 }
 0x1f2   :  { %v286_v45 = vadd.f32 %v285_v43, %v284_v39  ;;  %v291_v46 = vrot.slane %v290_v44, 2 }
 0x1f4   :  { %v287_v47 = vrot.slane %v286_v45, 1  ;;  %v292_v48 = vadd.f32 %v291_v46, %v290_v44 }
 0x1f6   :  { %v293_v49 = vrot.slane %v292_v48, 1  ;;  %v288_v50 = vadd.f32 %v287_v47, %v286_v45 }
 0x1f8   :  { %v294_v51 = vadd.f32 %v293_v49, %v292_v48  ;;  %v302_v54 = vadd.f32 %v335_v52, %v288_v50 }
 0x1fa   :  { %v303_v53 = vadd.f32 %v335_v52, %v294_v51 }
 0x1fc   :  { %v306_v55 = vrot.slane %v303_v53, 7 }
 0x1fe   :  { %v308_v56 = vsel %vm307_vm7, %v306_v55, %v302_v54 }
 0x1ff   :  { %310 = vst [vmem:[#allocation8] sm:$0x3] %v308_v56 }
 0x200   :  { %449 = shalt.err (!%p446_p0)
}
 0x201   :  { %s450_s4 = scalar_lea.hbm %s577_s5, 32 }
 0x202   :  { %p451_p1 = scmp.ne.s32.totalorder %s577_s5, %s450_s4  ;;  %p454_p2 = scmp.lt.u32.totalorder %s450_s4, %s577_s5 }
 0x204   :  { %p456_p3 = pnand %p454_p2, %p451_p1 }
 0x206   :  { %459 = shalt.err (!%p456_p3)
}
 0x207   :  { %320 = dma.vmem_to_hbm [thread:$0]  %s318_s7, 32, %s577_s5, [#allocation4]  }
 0x208   :  { %464 = dma.done.wait [#allocation4], 32  }
 0x209   :  { %465 = vsyncadd [#allocation4], 4294967264 }
 0x20a   :  { %324 = vsyncpa [#allocation3], 1 }
 0x20b   :  { %325 = vsyncpa [#allocation6], 1 }
 0x20c   :  { %326 = vsyncpa [#allocation4], 1 }

</bundles_post_ra>
